<compile_context>
chip_gen: v5e
topology: v5e:2x2
jax: 0.10.0
libtpu: 0.0.40
codegen_flags: <defaults>
</compile_context>

<pallas_src>
import functools

import jax
import jax.numpy as jnp
from jax.experimental import pallas as pl
from jax.experimental.pallas import tpu as pltpu


def _pick_hw_tile(HW, c_in, c_out, itemsize, budget_bytes=4 << 20):
    """Largest lane-aligned divisor of HW whose double-buffered x+out tiles fit the budget."""
    if HW % 128 != 0:
        # Fall back to the full plane (masked stores; correct, just not lane-dense).
        return HW
    for cand in range(HW, 0, -128):
        if HW % cand != 0:
            continue
        # double-buffered x block + out block
        if 2 * 2 * (c_in + c_out) * cand * itemsize <= budget_bytes:
            return cand
    return 128


def _pick_b_block(B):
    """Batch elements per grid step; keep >=2 steps on the parallel batch axis (v7x: 2 TCs)."""
    for d in (8, 4, 2):
        if B % d == 0 and B // d >= 2:
            return d
    return 1


@functools.partial(jax.jit, static_argnames=("c_out",))
def res_block_conditional(images, contexts, lin_w, lin_b, c_out=None):
    """images: [B, C, H, W], contexts: [B, E], lin_w: [c_out*c_in, E], lin_b: [c_out*c_in]."""
    B, C, H, W = images.shape
    c_in = C
    if c_out is None:
        c_out = c_in
    HW = H * W

    # --- glue (MapLangSemanticFilter.precompute_conv_weights), fused in the same jit ---
    conv_w = (contexts @ lin_w.T + lin_b[None, :]).reshape(B, c_out, c_in)
    if c_in == c_out:
        # Fold the residual into the 1x1-conv weights: conv(x, W) + x == conv(x, W + I).
        conv_w = conv_w + jnp.eye(c_in, dtype=conv_w.dtype)[None]
    conv_w = conv_w.astype(images.dtype)

    x_flat = images.reshape(B, c_in, HW)

    itemsize = jnp.dtype(images.dtype).itemsize
    tile_hw = _pick_hw_tile(HW, c_in, c_out, itemsize)
    b_blk = _pick_b_block(B)
    grid = (B // b_blk, HW // tile_hw)

    def kernel(w_ref, x_ref, o_ref):
        # w_ref: (B, c_out, c_in)     -- whole tensor, VMEM-resident (constant block index)
        # x_ref: (b_blk, c_in, tile_hw)
        # o_ref: (b_blk, c_out, tile_hw)
        b0 = pl.program_id(0) * b_blk
        for i in range(b_blk):                       # static unroll (b_blk is tiny)
            w = w_ref[b0 + i]                        # (c_out, c_in), residual already folded in
            # Mem-bound kernel: the tiny MXU dot hides entirely under the streaming DMA.
            y = jnp.dot(w, x_ref[i], preferred_element_type=jnp.float32)
            o_ref[i] = y.astype(o_ref.dtype)

    # VMEM budget: resident weights + double-buffered x/out tiles (+ headroom).
    vmem_bytes = (B * c_out * c_in * itemsize
                  + 2 * 2 * (c_in + c_out) * tile_hw * itemsize)
    vmem_limit = int(min(max(4 * vmem_bytes, 16 << 20), 64 << 20))

    out_flat = pl.pallas_call(
        kernel,
        out_shape=jax.ShapeDtypeStruct((B, c_out, HW), images.dtype),
        grid_spec=pltpu.PrefetchScalarGridSpec(
            num_scalar_prefetch=0,
            grid=grid,
            in_specs=[
                # Whole weight tensor, fetched once and kept resident across the grid.
                pl.BlockSpec((B, c_out, c_in), lambda b, h: (0, 0, 0)),
                pl.BlockSpec((b_blk, c_in, tile_hw), lambda b, h: (b, 0, h)),
            ],
            out_specs=pl.BlockSpec((b_blk, c_out, tile_hw), lambda b, h: (b, 0, h)),
        ),
        compiler_params=pltpu.CompilerParams(
            dimension_semantics=("parallel", "parallel"),
            vmem_limit_bytes=vmem_limit,
        ),
    )(conv_w, x_flat)

    return out_flat.reshape(B, c_out, H, W)


if __name__ == "__main__":
    key = jax.random.PRNGKey(0)
    k_img, k_ctx, k_w, k_w2 = jax.random.split(key, 4)

    # Small shapes consistent with the module: batch=2, channels=8, spatial=16x16, text_embed=16.
    B, C, H, W = 2, 8, 16, 16
    E = 16
    images = jax.random.normal(k_img, (B, C, H, W), dtype=jnp.float32)
    contexts = jax.random.normal(k_ctx, (B, E), dtype=jnp.float32)

    # lang_gate linear: nn.Linear(text_embed_size, c_in * c_out); init_weights():
    # xavier_uniform weight, zero bias. Deterministic synthetic init.
    fan_in, fan_out = E, C * C
    limit = (6.0 / (fan_in + fan_out)) ** 0.5
    lin_w = jax.random.uniform(k_w, (C * C, E), dtype=jnp.float32, minval=-limit, maxval=limit)
    lin_b = jnp.zeros((C * C,), dtype=jnp.float32)

    out = res_block_conditional(images, contexts, lin_w, lin_b)
    out = jax.block_until_ready(out)

    # Pure-JAX reference (residual case, c_in == c_out).
    conv_w_ref = (contexts @ lin_w.T + lin_b[None, :]).reshape(B, C, C)
    ref = jnp.einsum("boc,bchw->bohw", conv_w_ref, images) + images
    assert out.shape == (B, C, H, W)
    assert jnp.allclose(out, ref, atol=1e-4, rtol=1e-4), "mismatch vs reference (residual)"

    # Non-residual case (c_out != c_in): module skips the residual add.
    C_OUT = 4
    lin_w2 = jax.random.uniform(k_w2, (C_OUT * C, E), dtype=jnp.float32, minval=-limit, maxval=limit)
    lin_b2 = jnp.zeros((C_OUT * C,), dtype=jnp.float32)
    out2 = jax.block_until_ready(
        res_block_conditional(images, contexts, lin_w2, lin_b2, c_out=C_OUT))
    conv_w_ref2 = (contexts @ lin_w2.T + lin_b2[None, :]).reshape(B, C_OUT, C)
    ref2 = jnp.einsum("boc,bchw->bohw", conv_w_ref2, images)
    assert out2.shape == (B, C_OUT, H, W)
    assert jnp.allclose(out2, ref2, atol=1e-4, rtol=1e-4), "mismatch vs reference (non-residual)"

    print("KERNEL_OK")
</pallas_src>

<mosaic_0001>
module attributes {stable_mosaic.version = 11 : i64} {
  func.func @kernel(%arg0: i32, %arg1: i32, %arg2: memref<2x8x8xf32, #tpu.memory_space<vmem>>, %arg3: memref<1x8x256xf32, #tpu.memory_space<vmem>>, %arg4: memref<1x8x256xf32, #tpu.memory_space<vmem>>) attributes {dimension_semantics = [#tpu.dimension_semantics<parallel>, #tpu.dimension_semantics<parallel>], iteration_bounds = array<i64: 2, 1>, scalar_prefetch = 0 : i64, scratch_operands = 0 : i64, tpu.core_type = #tpu.core_type<tc>, window_params = [{pipeline_mode = #tpu.pipeline_mode<synchronous>, transform_indices = @transform_0, window_bounds = array<i64: 2, 8, 8>}, {transform_indices = @transform_1, window_bounds = array<i64: 1, 8, 256>}, {transform_indices = @transform_2, window_bounds = array<i64: 1, 8, 256>}]} {
    %c1_i32 = arith.constant 1 : i32
    %0 = arith.muli %arg0, %c1_i32 : i32
    %c0_i32 = arith.constant 0 : i32
    %1 = arith.addi %0, %c0_i32 : i32
    %2 = arith.index_cast %1 : i32 to index
    %c0 = arith.constant 0 : index
    %c0_0 = arith.constant 0 : index
    %3 = vector.load %arg2[%2, %c0, %c0_0] : memref<2x8x8xf32, #tpu.memory_space<vmem>>, vector<1x8x8xf32>
    %4 = vector.shape_cast %3 : vector<1x8x8xf32> to vector<8x8xf32>
    %c0_1 = arith.constant 0 : index
    %c0_2 = arith.constant 0 : index
    %c0_3 = arith.constant 0 : index
    %5 = vector.load %arg3[%c0_1, %c0_2, %c0_3] : memref<1x8x256xf32, #tpu.memory_space<vmem>>, vector<1x8x256xf32>
    %6 = vector.shape_cast %5 : vector<1x8x256xf32> to vector<8x256xf32>
    %cst = arith.constant dense<0.000000e+00> : vector<8x256xf32>
    %7 = tpu.matmul %4, %6, %cst {dimension_numbers = #tpu.dot_dimension_numbers<[1], [0], [0], [1], [0, 0, 1, 1], [], []>} : vector<8x8xf32>, vector<8x256xf32>, vector<8x256xf32> -> vector<8x256xf32>
    %c0_4 = arith.constant 0 : index
    %c0_5 = arith.constant 0 : index
    %c0_6 = arith.constant 0 : index
    %8 = vector.load %arg4[%c0_4, %c0_5, %c0_6] : memref<1x8x256xf32, #tpu.memory_space<vmem>>, vector<1x8x256xf32>
    %9 = vector.shape_cast %8 : vector<1x8x256xf32> to vector<8x256xf32>
    %10 = vector.shape_cast %7 : vector<8x256xf32> to vector<1x8x256xf32>
    tpu.vector_store %arg4[%c0_4, %c0_5, %c0_6], %10 {strides = array<i32>} : memref<1x8x256xf32, #tpu.memory_space<vmem>>, vector<1x8x256xf32>,
    return
  }
  func.func @transform_0(%arg0: i32, %arg1: i32) -> (i32, i32, i32) {
    %c0_i32 = arith.constant 0 : i32
    %c0_i32_0 = arith.constant 0 : i32
    %c0_i32_1 = arith.constant 0 : i32
    %c0_i32_2 = arith.constant 0 : i32
    return %c0_i32, %c0_i32_0, %c0_i32_1 : i32, i32, i32
  }
  func.func @transform_1(%arg0: i32, %arg1: i32) -> (i32, i32, i32) {
    %c0_i32 = arith.constant 0 : i32
    %c0_i32_0 = arith.constant 0 : i32
    return %arg0, %c0_i32, %arg1 : i32, i32, i32
  }
  func.func @transform_2(%arg0: i32, %arg1: i32) -> (i32, i32, i32) {
    %c0_i32 = arith.constant 0 : i32
    %c0_i32_0 = arith.constant 0 : i32
    return %arg0, %c0_i32, %arg1 : i32, i32, i32
  }
}

</mosaic_0001>

<bundles_post_ra>
// kernel: res_block_conditional.1
= control target key start
LH: loop header
LB: loop body
LE: loop exit
PB: predicated region body
PF: predicated region fallthrough
CT: control target
= control target key end

     0   :  { %s402_s9 = smov 0   ;;  %s404_s10 = smov 0   ;;  %s435_s0 = inlined_call_operand.vmem [shape: f32[2,8,8], index: 0, kind: input, shape index: {}]   ;;  %s436_s1 = inlined_call_operand.vmem [shape: f32[2,8,256], index: 1, kind: input, shape index: {}]   ;;  %s437_s2 = inlined_call_operand.vmem [shape: f32[2,8,256], index: 2, kind: output, shape index: {}]  }
   0x1   :  { %s406_s11 = smov 0  }
   0x2 LB: > { %s24_s12 = sadd.s32 1, %s381_s10  ;;  %p327_p0 = scmp.ge.s32.totalorder %s385_s11, 1  ;;  %s385_s11 = sphi %s406_s11, %s12_s11   ;;  %s381_s10 = sphi %s404_s10, %s439_s10   ;;  %s377_s9 = sphi %s402_s9, %s438_s9  }
   0x3   : > { %p26_p1 = scmp.ge.s32.totalorder %s24_s12, 2  ;;  %p133_p2 = scmp.lt.s32.totalorder %s385_s11, 3 }
   0x5   : > { %s441_s12 = smov (%p26_p1, %s24_s12), 0  ;;  %p134_p3 = pnand %p327_p0, %p133_p2 }
   0x6   : > { %p164_p4 = scmp.lt.s32.totalorder (!%p134_p3), %s377_s9, 1  ;;  %s332_s13 = sshll.u32 (!%p134_p3), %s377_s9, 3 }
   0x7   : > { %137 = sbr.rel (%p134_p3) target bundleno = 145 (0x91), region = 28  ;;  %s184_s16 = scalar_lea.vmem (!%p134_p3), %s435_s0, %s332_s13 }
   0xc   : > { %s443_s9 = smov (!%p164_p4, %s377_s9), 1  ;;  %v185_v0 = vld [vmem:[%s184_s16] sm:$0xff]  ;;  %vm188_vm0 = vcmask 64512  }
   0xd   : > { %s337_s17 = sshll.u32 %s443_s9, 4 }
   0xe   : > { %s171_s20 = scalar_lea.vmem %s436_s1, %s337_s17  ;;  %s181_s23 = scalar_lea.vmem %s437_s2, %s337_s17 }
   0xf   : > { %v186_v1 = vld [vmem:[%s171_s20] sm:$0xff]  ;;  %v187_v2 = vld [vmem:[%s171_s20 + $0x8] sm:$0xff] }
  0x10   : > { %207 = vmatpush.msra.mxu0 %v186_v1  ;;  %227 = vmatpush.msra.mxu1 %v187_v2 }
  0x11   : > { %333 = vmatmul.msk.f32.vlgmr.msra.gmra.mxu0 %vm188_vm0, %v185_v0  ;;  %334 = vmatmul.msk.f32.vlgmr.msra.gmra.mxu1 %vm188_vm0, %v185_v0 }
  0x8e   : > { %v209_v3 = vpop.f32.mrf.mxu0  ;;  %v229_v4 = vpop.f32.mrf.mxu1 }
  0x8f   : > { %232 = vst [vmem:[%s181_s23] sm:$0xff] %v209_v3 }
  0x90   : > { %233 = vst [vmem:[%s181_s23 + $0x8] sm:$0xff] %v229_v4 }
  0x91 PF: > { %s12_s11 = sadd.s32 1, %s385_s11   ;;  %s438_s9 = smov %s381_s10 }
  0x92   : > { %p9_p5 = scmp.ge.s32.totalorder %s12_s11, 4   ;;  %s439_s10 = smov %s441_s12 }
  0x94   :  { %11 = sbr.rel (!%p9_p5) target bundleno = 2 (0x2), region = 59 }

</bundles_post_ra>
